<compile_context>
chip_gen: v7x
topology: tpu7x:2x2x1
jax: 0.10.0
libtpu: 0.0.40
codegen_flags: <defaults>
</compile_context>

<pallas_src>
import numpy as np
import jax
import jax.numpy as jnp
from jax.experimental import pallas as pl
from jax.experimental.pallas import tpu as pltpu

LANE = 128                       # vreg lane width
MAX_TILE_BYTES = 2 * 1024 * 1024 # per-buffer tile cap: 5 bufs x 2 (dbl-buf) ~ 20 MiB


def _add4_kernel(a_ref, b_ref, c_ref, d_ref, o_ref):
    # Pure VPU elementwise sum of the four tiles (4 vld / 3 VALU / 1 vst per vreg).
    o_ref[...] = a_ref[...] + b_ref[...] + c_ref[...] + d_ref[...]


def _round_up(x, m):
    return -(-x // m) * m


def add_fusion_pallas(x_list):
    """Elementwise x[0] + x[1] + x[2] + x[3] for four same-shaped arrays."""
    assert len(x_list) == 4
    assert len({tuple(x.shape) for x in x_list}) == 1, "inputs must share a shape"

    orig_shape = x_list[0].shape
    dtype = jnp.result_type(*(x.dtype for x in x_list))
    x_list = [x.astype(dtype) for x in x_list]

    total = int(np.prod(orig_shape)) if len(orig_shape) else 1
    nbytes = jnp.dtype(dtype).itemsize
    sublane = max(8, 32 // nbytes)          # 8 (f32) / 16 (bf16) / 32 (int8/fp8)

    rows = -(-total // LANE)                # cdiv(total, 128)
    needs_pad = (rows * LANE != total)      # rare path: pad <= 127 elements

    # Tile sizing:
    #  * cap one buffer at MAX_TILE_BYTES (keeps total VMEM a few tens of MiB),
    #  * target >= 2 grid steps so ("parallel",) shards across both v7x TCs,
    #  * keep sublane alignment so the BlockSpec obeys the (8,128) rule.
    cap_rows = max(sublane,
                   (MAX_TILE_BYTES // (LANE * nbytes)) // sublane * sublane)
    half_rows = _round_up(-(-rows // 2), sublane)
    tile_rows = max(sublane, min(cap_rows, half_rows))

    grid = (pl.cdiv(rows, tile_rows),)      # ragged last block handled by Pallas

    def to_slab(x):
        flat = jnp.reshape(x, (-1,))
        if needs_pad:
            flat = jnp.pad(flat, (0, rows * LANE - total))
        return flat.reshape(rows, LANE)

    slabs = [to_slab(x) for x in x_list]

    spec = pl.BlockSpec((tile_rows, LANE), lambda i: (i, 0))

    out = pl.pallas_call(
        _add4_kernel,
        out_shape=jax.ShapeDtypeStruct((rows, LANE), dtype),
        grid=grid,
        in_specs=[spec] * 4,
        out_specs=spec,
        compiler_params=pltpu.CompilerParams(
            # Independent row tiles -> shard across TensorCores (v7x megacore).
            dimension_semantics=("parallel",),
            # Explicit scoped-VMEM budget; tiles use ~20 MiB max so this is
            # safe on every generation (v5e/v6e/v7x).
            vmem_limit_bytes=32 * 1024 * 1024,
        ),
        cost_estimate=pl.CostEstimate(
            flops=3 * total,
            transcendentals=0,
            bytes_accessed=5 * rows * LANE * nbytes,   # 4 reads + 1 write (HBM-bound)
        ),
    )(*slabs)

    out_flat = out.reshape(-1)
    if needs_pad:
        out_flat = out_flat[:total]
    return out_flat.reshape(orig_shape)


def add_fusion_reference(x_list):
    return x_list[0] + x_list[1] + x_list[2] + x_list[3]


if __name__ == "__main__":
    n, c, h, w = 2, 4, 16, 16
    key = jax.random.PRNGKey(0)
    kx = jax.random.split(key, 4)
    x_list = [jax.random.normal(kx[i], (n, c, h, w), jnp.float32) for i in range(4)]

    out = add_fusion_pallas(x_list)
    out = jax.block_until_ready(out)

    ref = jax.block_until_ready(add_fusion_reference(x_list))
    np.testing.assert_allclose(np.asarray(out), np.asarray(ref), rtol=1e-6, atol=1e-6)

    print("KERNEL_OK")
</pallas_src>

<mosaic_0001>
module attributes {stable_mosaic.version = 11 : i64} {
  func.func @_add4_kernel(%arg0: i32, %arg1: memref<8x128xf32, #tpu.memory_space<vmem>>, %arg2: memref<8x128xf32, #tpu.memory_space<vmem>>, %arg3: memref<8x128xf32, #tpu.memory_space<vmem>>, %arg4: memref<8x128xf32, #tpu.memory_space<vmem>>, %arg5: memref<8x128xf32, #tpu.memory_space<vmem>>) attributes {dimension_semantics = [#tpu.dimension_semantics<parallel>], iteration_bounds = array<i64: 2>, scalar_prefetch = 0 : i64, scratch_operands = 0 : i64, tpu.core_type = #tpu.core_type<tc>, window_params = [{transform_indices = @transform_0, window_bounds = array<i64: 8, 128>}, {transform_indices = @transform_1, window_bounds = array<i64: 8, 128>}, {transform_indices = @transform_2, window_bounds = array<i64: 8, 128>}, {transform_indices = @transform_3, window_bounds = array<i64: 8, 128>}, {transform_indices = @transform_4, window_bounds = array<i64: 8, 128>}]} {
    %c0 = arith.constant 0 : index
    %c0_0 = arith.constant 0 : index
    %0 = vector.load %arg1[%c0, %c0_0] : memref<8x128xf32, #tpu.memory_space<vmem>>, vector<8x128xf32>
    %c0_1 = arith.constant 0 : index
    %c0_2 = arith.constant 0 : index
    %1 = vector.load %arg2[%c0_1, %c0_2] : memref<8x128xf32, #tpu.memory_space<vmem>>, vector<8x128xf32>
    %2 = arith.addf %0, %1 : vector<8x128xf32>
    %c0_3 = arith.constant 0 : index
    %c0_4 = arith.constant 0 : index
    %3 = vector.load %arg3[%c0_3, %c0_4] : memref<8x128xf32, #tpu.memory_space<vmem>>, vector<8x128xf32>
    %4 = arith.addf %2, %3 : vector<8x128xf32>
    %c0_5 = arith.constant 0 : index
    %c0_6 = arith.constant 0 : index
    %5 = vector.load %arg4[%c0_5, %c0_6] : memref<8x128xf32, #tpu.memory_space<vmem>>, vector<8x128xf32>
    %6 = arith.addf %4, %5 : vector<8x128xf32>
    %c0_7 = arith.constant 0 : index
    %c0_8 = arith.constant 0 : index
    %7 = vector.load %arg5[%c0_7, %c0_8] : memref<8x128xf32, #tpu.memory_space<vmem>>, vector<8x128xf32>
    tpu.vector_store %arg5[%c0_7, %c0_8], %6 {strides = array<i32>} : memref<8x128xf32, #tpu.memory_space<vmem>>, vector<8x128xf32>,
    return
  }
  func.func @transform_0(%arg0: i32) -> (i32, i32) {
    %c0_i32 = arith.constant 0 : i32
    %c0_i32_0 = arith.constant 0 : i32
    return %arg0, %c0_i32 : i32, i32
  }
  func.func @transform_1(%arg0: i32) -> (i32, i32) {
    %c0_i32 = arith.constant 0 : i32
    %c0_i32_0 = arith.constant 0 : i32
    return %arg0, %c0_i32 : i32, i32
  }
  func.func @transform_2(%arg0: i32) -> (i32, i32) {
    %c0_i32 = arith.constant 0 : i32
    %c0_i32_0 = arith.constant 0 : i32
    return %arg0, %c0_i32 : i32, i32
  }
  func.func @transform_3(%arg0: i32) -> (i32, i32) {
    %c0_i32 = arith.constant 0 : i32
    %c0_i32_0 = arith.constant 0 : i32
    return %arg0, %c0_i32 : i32, i32
  }
  func.func @transform_4(%arg0: i32) -> (i32, i32) {
    %c0_i32 = arith.constant 0 : i32
    %c0_i32_0 = arith.constant 0 : i32
    return %arg0, %c0_i32 : i32, i32
  }
}

</mosaic_0001>

<bundles_post_ra>
// kernel: tpu_custom_call.1
= control target key start
LH: loop header
LB: loop body
LE: loop exit
PB: predicated region body
PF: predicated region fallthrough
CT: control target
= control target key end

     0   :  { %s1046_s0 = inlined_call_operand.hbm [shape: f32[16,128], index: 0, kind: input, shape index: {}]   ;;  %s1047_s1 = inlined_call_operand.hbm [shape: f32[16,128], index: 1, kind: input, shape index: {}]   ;;  %s1048_s2 = inlined_call_operand.hbm [shape: f32[16,128], index: 2, kind: input, shape index: {}]   ;;  %s1049_s3 = inlined_call_operand.hbm [shape: f32[16,128], index: 3, kind: input, shape index: {}]   ;;  %s1050_s4 = inlined_call_operand.hbm [shape: f32[16,128], index: 4, kind: output, shape index: {}]  }
   0x1   :  { %1056 = sst [smem:[#allocation17_spill]] %s1047_s1 }
   0x2   :  { %9 = vsyncpa [#allocation3], 0 }
   0x3   :  { %11 = vsyncpa [#allocation3 + $0x1], 0 }
   0x4   :  { %12 = vsyncpa [#allocation6], 0 }
   0x5   :  { %14 = vsyncpa [#allocation6 + $0x1], 0 }
   0x6   :  { %15 = vsyncpa [#allocation9], 0 }
   0x7   :  { %17 = vsyncpa [#allocation9 + $0x1], 0 }
   0x8   :  { %18 = vsyncpa [#allocation4], 0 }
   0x9   :  { %20 = vsyncpa [#allocation4 + $0x1], 0  ;;  %s787_s15 = smov 0   ;;  %s789_s16 = smov 0  }
   0xa   :  { %s791_s17 = smov 0   ;;  %s793_s18 = smov 0  }
   0xb LB: > { %1057 = sst [smem:[#allocation15_spill]] %s751_s17  ;;  %s808_s19 = sadd.s32 4294967295, %s755_s18   ;;  %s755_s18 = sphi %s793_s18, %s1079_s18   ;;  %s751_s17 = sphi %s791_s17, %s1076_s17   ;;  %s747_s16 = sphi %s789_s16, %s1078_s16   ;;  %s743_s15 = sphi %s787_s15, %s1077_s15  }
   0xc   : > { %s479_s20 = sadd.s32 4294967294, %s755_s18   ;;  %s812_s21 = sadd.s32 1, %s755_s18  }
   0xd   : > { %s33_s22 = sadd.s32 1, %s751_s17  ;;  %s30_s23 = ssub.s32 %s755_s18, %s812_s21 }
   0xe   : > { %p40_p0 = scmp.ne.s32.totalorder %s751_s17, %s747_s16  ;;  %p31_p1 = scmp.eq.s32.totalorder %s30_s23, 0 }
   0xf   : > { %p41_p2 = scmp.eq.s32.totalorder %s755_s18, 0  ;;  %p46_p3 = scmp.ne.s32.totalorder %s747_s16, %s743_s15 }
  0x10   : > { %p47_p4 = scmp.eq.s32.totalorder %s808_s19, 0  ;;  %p148_p7 = scmp.eq.s32.totalorder %s808_s19, 1 }
  0x11   : > { %s824_s24 = scalar_select %p31_p1, %s751_s17, %s33_s22  }
  0x12   : > { %p42_p5 = por %p41_p2, %p40_p0  ;;  %p826_p6 = por %p47_p4, %p46_p3 }
  0x13   : > { %1058 = sst [smem:[#allocation16_spill]] %s824_s24  ;;  %p154_p8 = scmp.eq.s32.totalorder %s479_s20, 1 }
  0x14   : > { %s1059_s25 = scalar_select %p826_p6, 1, 0 }
  0x15   : > { %p527_p10 = scmp.lt.s32.totalorder %s755_s18, 2  ;;  %p833_p11 = por %p148_p7, %p40_p0 }
  0x16   : > { %p837_p12 = por %p154_p8, %p46_p3  ;;  %s842_s28 = sand.u32 1, %s751_s17  }
  0x17   : > { %s1060_s26 = scalar_select %p833_p11, 1, 0 }
  0x18   : > { %s1061_s27 = scalar_select %p837_p12, 1, 0 }
  0x19   : > { %s845_s29 = sshll.u32 %s755_s18, 7  ;;  %s848_s30 = sshll.u32 %s842_s28, 3 }
  0x1a   : > { %p850_p13 = pnand %p527_p10, %p42_p5  ;;  %s192_s6 = sand.u32 1, %s755_s18  }
  0x1b   : > { %s1063_s1 = sld [smem:[#allocation17_spill]]  ;;  %s196_s10 = scalar_lea.vmem [#allocation5], %s848_s30 }
  0x1c   : > { %s1062_s5 = scalar_select %p850_p13, 1, 0 }
  0x1d   : > { %s203_s11 = sshll.u32 %s196_s10, 4  ;;  %s865_s12 = scalar_lea.sflag [#allocation6], %s192_s6  ;;  %s862_s11 = int_to_ptr.vmem [resolvable:$true] %s203_s11 }
  0x1e   : > { %p871_p2 = pneg %p850_p13 }
  0x21   : > { %s859_s9 = scalar_lea.hbm %s1063_s1, %s845_s29  ;;  %s566_s23 = scalar_lea.hbm %s1063_s1, 256 }
  0x22   : > { %s561_s13 = scalar_lea.hbm %s859_s9, 128  ;;  %p567_p5 = scmp.lt.u32.totalorder %s859_s9, %s1063_s1 }
  0x23   : > { %p562_p1 = scmp.ne.s32.totalorder %s859_s9, %s561_s13  ;;  %p568_p7 = scmp.lt.u32.totalorder %s566_s23, %s561_s13 }
  0x24   : > { %p570_p10 = scmp.lt.u32.totalorder %s561_s13, %s859_s9 }
  0x25   : > { %p564_p3 = pnand %p871_p2, %p562_p1  ;;  %p569_p8 = por %p568_p7, %p567_p5 }
  0x27   : > { %p565_p4 = pneg %p564_p3  ;;  %p571_p9 = por %p570_p10, %p569_p8 }
  0x29   : > { %p572_p0 = pnand %p571_p9, %p565_p4 }
  0x2b   : > { %575 = shalt.err (!%p572_p0)
}
  0x2c   : > { %s576_s6 = scalar_lea.vmem %s862_s11, 128  ;;  %s757_s10 = smov [#allocation5]  }
  0x2d   : > { %p577_p1 = scmp.ne.s32.totalorder %s862_s11, %s576_s6  ;;  %s581_s20 = sshll.u32 %s757_s10, 4  ;;  %s582_s20 = int_to_ptr.vmem [resolvable:$false] %s581_s20 }
  0x2e   : > { %s583_s22 = scalar_lea.vmem %s582_s20, 256  ;;  %p584_p11 = scmp.lt.s32.totalorder %s862_s11, %s582_s20 }
  0x2f   : > { %p579_p3 = pnand %p577_p1, %p871_p2  ;;  %p585_p6 = scmp.lt.s32.totalorder %s583_s22, %s576_s6 }
  0x31   : > { %p580_p12 = pneg %p579_p3  ;;  %p586_p5 = por %p585_p6, %p584_p11 }
  0x33   : > { %p587_p7 = pnand %p586_p5, %p580_p12 }
  0x35   : > { %590 = shalt.err (!%p587_p7)
}
  0x36   : > { %516 = dma.hbm_to_vmem [thread:$0]  (!%p850_p13), %s859_s9, 128, %s862_s11, %s865_s12  }
  0x37   : > { %p244_p9 = scmp.lt.s32.totalorder %s755_s18, 3  ;;  %s900_s7 = scalar_lea.hbm %s1046_s0, %s845_s29 }
  0x38   : > { %p1065_p6 = scmp.ge.s32.totalorder %s755_s18, 1  ;;  %s178_s6 = scalar_lea.vmem [#allocation2], %s848_s30 }
  0x39   : > { %s185_s10 = sshll.u32 %s178_s6, 4  ;;  %s175_s20 = scalar_lea.sflag [#allocation3], %s842_s28  ;;  %s186_s10 = int_to_ptr.vmem [resolvable:$true] %s185_s10 }
  0x3a   : > { %p904_p11 = pnand %p1065_p6, %p244_p9  ;;  %s591_s9 = scalar_lea.hbm %s900_s7, 128 }
  0x3b   : > { %p592_p12 = scmp.ne.s32.totalorder %s900_s7, %s591_s9  ;;  %s596_s13 = scalar_lea.hbm %s1046_s0, 256 }
  0x3c   : > { %s1066_s8 = scalar_select %p904_p11, 1, 0 }
  0x3d   : > { %p594_p0 = pnand %p592_p12, %p871_p2  ;;  %p597_p8 = scmp.lt.u32.totalorder %s900_s7, %s1046_s0 }
  0x3e   : > { %p598_p10 = scmp.lt.u32.totalorder %s596_s13, %s591_s9  ;;  %p600_p3 = scmp.lt.u32.totalorder %s591_s9, %s900_s7 }
  0x3f   : > { %p595_p4 = pneg %p594_p0 }
  0x40   : > { %p599_p1 = por %p598_p10, %p597_p8 }
  0x42   : > { %p601_p5 = por %p600_p3, %p599_p1 }
  0x44   : > { %p602_p7 = pnand %p601_p5, %p595_p4 }
  0x46   : > { %605 = shalt.err (!%p602_p7)
}
  0x47   : > { %s606_s6 = scalar_lea.vmem %s186_s10, 128  ;;  %s758_s24 = smov [#allocation2]  }
  0x48   : > { %p607_p9 = scmp.ne.s32.totalorder %s186_s10, %s606_s6  ;;  %s611_s17 = sshll.u32 %s758_s24, 4  ;;  %s612_s17 = int_to_ptr.vmem [resolvable:$false] %s611_s17 }
  0x49   : > { %s613_s11 = scalar_lea.vmem %s612_s17, 256  ;;  %p614_p0 = scmp.lt.s32.totalorder %s186_s10, %s612_s17 }
  0x4a   : > { %p609_p6 = pnand %p607_p9, %p871_p2  ;;  %p615_p11 = scmp.lt.s32.totalorder %s613_s11, %s606_s6 }
  0x4c   : > { %p610_p12 = pneg %p609_p6  ;;  %p616_p13 = por %p615_p11, %p614_p0 }
  0x4e   : > { %p617_p8 = pnand %p616_p13, %p610_p12 }
  0x50   : > { %620 = shalt.err (!%p617_p8)
}
  0x51   : > { %p1067_p10 = scmp.ne.s32.totalorder %s1062_s5, 0  ;;  %s931_s22 = scalar_lea.hbm %s1048_s2, %s845_s29 }
  0x52   : > { %s214_s17 = scalar_lea.vmem [#allocation7], %s848_s30  ;;  %s621_s13 = scalar_lea.hbm %s931_s22, 128 }
  0x53   : > { %513 = dma.hbm_to_vmem [thread:$0]  (!%p1067_p10), %s900_s7, 128, %s186_s10, %s175_s20  }
  0x54   : > { %s221_s24 = sshll.u32 %s214_s17, 4  ;;  %p622_p13 = scmp.ne.s32.totalorder %s931_s22, %s621_s13  ;;  %s222_s24 = int_to_ptr.vmem [resolvable:$true] %s221_s24 }
  0x55   : > { %s626_s7 = scalar_lea.hbm %s1048_s2, 256  ;;  %p627_p1 = scmp.lt.u32.totalorder %s931_s22, %s1048_s2 }
  0x56   : > { %p624_p11 = pnand %p622_p13, %p871_p2  ;;  %p628_p3 = scmp.lt.u32.totalorder %s626_s7, %s621_s13 }
  0x57   : > { %p630_p7 = scmp.lt.u32.totalorder %s621_s13, %s931_s22 }
  0x58   : > { %p625_p4 = pneg %p624_p11  ;;  %p629_p5 = por %p628_p3, %p627_p1 }
  0x5a   : > { %p631_p9 = por %p630_p7, %p629_p5 }
  0x5c   : > { %p632_p6 = pnand %p631_p9, %p625_p4 }
  0x5e   : > { %635 = shalt.err (!%p632_p6)
}
  0x5f   : > { %s636_s11 = scalar_lea.vmem %s222_s24, 128  ;;  %s759_s1 = smov [#allocation7]  }
  0x60   : > { %p637_p12 = scmp.ne.s32.totalorder %s222_s24, %s636_s11  ;;  %s641_s9 = sshll.u32 %s759_s1, 4  ;;  %s642_s9 = int_to_ptr.vmem [resolvable:$false] %s641_s9 }
  0x61   : > { %s643_s17 = scalar_lea.vmem %s642_s9, 256  ;;  %p644_p13 = scmp.lt.s32.totalorder %s222_s24, %s642_s9 }
  0x62   : > { %p639_p0 = pnand %p637_p12, %p871_p2  ;;  %p645_p11 = scmp.lt.s32.totalorder %s643_s17, %s636_s11 }
  0x64   : > { %p640_p8 = pneg %p639_p0  ;;  %p646_p10 = por %p645_p11, %p644_p13 }
  0x66   : > { %p647_p1 = pnand %p646_p10, %p640_p8 }
  0x68   : > { %650 = shalt.err (!%p647_p1)
}
  0x69   : > { %p1068_p3 = scmp.ne.s32.totalorder %s1062_s5, 0  ;;  %s956_s6 = scalar_lea.hbm %s1049_s3, %s845_s29 }
  0x6a   : > { %s232_s7 = scalar_lea.vmem [#allocation8], %s848_s30  ;;  %s229_s20 = scalar_lea.sflag [#allocation9], %s842_s28 }
  0x6b   : > { %519 = dma.hbm_to_vmem [thread:$0]  (!%p1068_p3), %s931_s22, 128, %s222_s24, %s865_s12  }
  0x6c   : > { %s239_s10 = sshll.u32 %s232_s7, 4  ;;  %s651_s11 = scalar_lea.hbm %s956_s6, 128  ;;  %s240_s10 = int_to_ptr.vmem [resolvable:$true] %s239_s10 }
  0x6d   : > { %p652_p10 = scmp.ne.s32.totalorder %s956_s6, %s651_s11  ;;  %s656_s22 = scalar_lea.hbm %s1049_s3, 256 }
  0x6e   : > { %p657_p7 = scmp.lt.u32.totalorder %s956_s6, %s1049_s3  ;;  %p658_p9 = scmp.lt.u32.totalorder %s656_s22, %s651_s11 }
  0x6f   : > { %p654_p4 = pnand %p652_p10, %p871_p2  ;;  %p660_p12 = scmp.lt.u32.totalorder %s651_s11, %s956_s6 }
  0x70   : > { %p659_p6 = por %p658_p9, %p657_p7 }
  0x71   : > { %p655_p5 = pneg %p654_p4 }
  0x72   : > { %p661_p0 = por %p660_p12, %p659_p6 }
  0x74   : > { %p662_p8 = pnand %p661_p0, %p655_p5 }
  0x76   : > { %665 = shalt.err (!%p662_p8)
}
  0x77   : > { %s666_s28 = scalar_lea.vmem %s240_s10, 128  ;;  %s760_s30 = smov [#allocation8]  }
  0x78   : > { %p667_p13 = scmp.ne.s32.totalorder %s240_s10, %s666_s28  ;;  %s671_s9 = sshll.u32 %s760_s30, 4  ;;  %s672_s9 = int_to_ptr.vmem [resolvable:$false] %s671_s9 }
  0x79   : > { %s673_s17 = scalar_lea.vmem %s672_s9, 256  ;;  %p674_p10 = scmp.lt.s32.totalorder %s240_s10, %s672_s9 }
  0x7a   : > { %p669_p11 = pnand %p667_p13, %p871_p2  ;;  %p675_p4 = scmp.lt.s32.totalorder %s673_s17, %s666_s28 }
  0x7c   : > { %p670_p1 = pneg %p669_p11  ;;  %p676_p3 = por %p675_p4, %p674_p10 }
  0x7e   : > { %p677_p7 = pnand %p676_p3, %p670_p1 }
  0x80   : > { %680 = shalt.err (!%p677_p7)
}
  0x81   : > { %p1069_p9 = scmp.ne.s32.totalorder %s1062_s5, 0  ;;  %p1070_p5 = scmp.ne.s32.totalorder %s1066_s8, 0 }
  0x82   : > { %s980_s14 = sand.u32 (!%p1070_p5), 1, %s747_s16   ;;  %p1071_p2 = scmp.ne.s32.totalorder (!%p1070_p5), %s1059_s25, 0 }
  0x83   : > { %522 = dma.hbm_to_vmem [thread:$0]  (!%p1069_p9), %s956_s6, 128, %s240_s10, %s229_s20  }
  0x84   : > { %248 = sbr.rel (%p1070_p5) target bundleno = 172 (0xac), region = 36  ;;  %s491_s13 = sshll.u32 (!%p1070_p5), %s980_s14, 3 }
  0x85   : > { %s251_s23 = scalar_lea.sflag (!%p1070_p5), [#allocation3], %s980_s14  ;;  %s254_s7 = scalar_lea.vmem (!%p1070_p5), [#allocation2], %s491_s13 }
  0x8b   : > { %726 = dma.done.wait (%p1071_p2), %s251_s23, 128  }
  0x8c   : > { %728 = vsyncadd (%p1071_p2), %s251_s23, 4294967168  ;;  %s259_s5 = sand.u32 1, %s808_s19   ;;  %s263_s8 = scalar_lea.vmem [#allocation5], %s491_s13 }
  0x8d   : > { %s260_s6 = scalar_lea.sflag [#allocation6], %s259_s5 }
  0x8e   : > { %730 = dma.done.wait (%p1071_p2), %s260_s6, 256  }
  0x8f   : > { %732 = vsyncadd (%p1071_p2), %s260_s6, 4294967040  ;;  %s272_s10 = scalar_lea.vmem [#allocation7], %s491_s13  ;;  %s278_s20 = scalar_lea.sflag [#allocation9], %s980_s14 }
  0x90   : > { %s281_s11 = scalar_lea.vmem [#allocation8], %s491_s13 }
  0x91   : > { %734 = dma.done.wait (%p1071_p2), %s278_s20, 128  }
  0x92   : > { %736 = vsyncadd (%p1071_p2), %s278_s20, 4294967168  ;;  %v321_v0 = vld [vmem:[%s254_s7] sm:$0xff]  ;;  %v322_v1 = vld [vmem:[%s263_s8] sm:$0xff]  ;;  %s320_s1 = scalar_lea.vmem [#allocation10], %s491_s13  ;;  %s497_s22 = sshll.u32 %s808_s19, 7 }
  0x93   : > { %v324_v2 = vld [vmem:[%s272_s10] sm:$0xff]  ;;  %v323_v3 = vadd.f32 %v322_v1, %v321_v0  ;;  %v326_v4 = vld [vmem:[%s281_s11] sm:$0xff]  ;;  %s343_s12 = sshll.u32 %s320_s1, 4  ;;  %s1004_s25 = scalar_lea.hbm %s1050_s4, %s497_s22  ;;  %s999_s12 = int_to_ptr.vmem [resolvable:$true] %s343_s12 }
  0x94   : > { %s330_s28 = scalar_lea.sflag [#allocation4], %s980_s14  ;;  %s681_s30 = scalar_lea.vmem %s999_s12, 128 }
  0x95   : > { %v325_v5 = vadd.f32 %v324_v2, %v323_v3  ;;  %p682_p3 = scmp.ne.s32.totalorder %s999_s12, %s681_s30  ;;  %p1072_p6 = scmp.ne.s32.totalorder %s1060_s26, 0 }
  0x96   : > { %s761_s19 = smov [#allocation10]  }
  0x97   : > { %v327_v6 = vadd.f32 %v326_v4, %v325_v5  ;;  %p683_p12 = pnand %p682_p3, %p1072_p6  ;;  %s685_s9 = sshll.u32 %s761_s19, 4  ;;  %s686_s9 = int_to_ptr.vmem [resolvable:$false] %s685_s9 }
  0x98   : > { %s687_s17 = scalar_lea.vmem %s686_s9, 256  ;;  %p688_p8 = scmp.lt.s32.totalorder %s999_s12, %s686_s9 }
  0x99   : > { %328 = vst [vmem:[%s320_s1] sm:$0xff] %v327_v6  ;;  %p684_p0 = pneg %p683_p12  ;;  %p689_p13 = scmp.lt.s32.totalorder %s687_s17, %s681_s30 }
  0x9b   : > { %p690_p11 = por %p689_p13, %p688_p8 }
  0x9d   : > { %p691_p1 = pnand %p690_p11, %p684_p0 }
  0x9f   : > { %694 = shalt.err (!%p691_p1)
}
  0xa0   : > { %s695_s14 = scalar_lea.hbm %s1004_s25, 128  ;;  %s699_s7 = scalar_lea.hbm %s1050_s4, 256 }
  0xa1   : > { %p696_p10 = scmp.ne.s32.totalorder %s1004_s25, %s695_s14  ;;  %p700_p9 = scmp.lt.u32.totalorder %s1004_s25, %s1050_s4 }
  0xa2   : > { %p701_p5 = scmp.lt.u32.totalorder %s699_s7, %s695_s14  ;;  %p703_p3 = scmp.lt.u32.totalorder %s695_s14, %s1004_s25 }
  0xa3   : > { %p697_p4 = pnand %p696_p10, %p1072_p6 }
  0xa4   : > { %p702_p2 = por %p701_p5, %p700_p9 }
  0xa5   : > { %p698_p7 = pneg %p697_p4 }
  0xa6   : > { %p704_p12 = por %p703_p3, %p702_p2 }
  0xa8   : > { %p705_p0 = pnand %p704_p12, %p698_p7 }
  0xaa   : > { %708 = shalt.err (!%p705_p0)
}
  0xab   : > { %508 = dma.vmem_to_hbm [thread:$0]  (%p1072_p6), %s999_s12, 128, %s1004_s25, %s330_s28  }
  0xac PF: > { %s355_s8 = sand.u32 1, %s743_s15   ;;  %p1073_p8 = scmp.ne.s32.totalorder %s1061_s27, 0 }
  0xad   : > { %p1074_p13 = scmp.ge.s32.totalorder %s755_s18, 2  ;;  %s356_s10 = scalar_lea.sflag [#allocation4], %s355_s8 }
  0xaf   : > { %p524_p11 = pnand %p1074_p13, %p1073_p8 }
  0xb1   : > { %738 = dma.done.wait (!%p524_p11), %s356_s10, 128  }
  0xb2   : > { %740 = vsyncadd (!%p524_p11), %s356_s10, 4294967168  ;;  %s1075_s20 = sld [smem:[#allocation15_spill]]  ;;  %s1076_s17 = sld [smem:[#allocation16_spill]] }
  0xb3   : > { %p23_p1 = scmp.ge.s32.totalorder %s812_s21, 4   ;;  %s1077_s15 = smov %s747_s16 }
  0xb4   : > { %s1079_s18 = smov %s812_s21 }
  0xb5   :  { %25 = sbr.rel (!%p23_p1) target bundleno = 11 (0xb), region = 118 }
  0xb8   : > { %s1078_s16 = smov %s1075_s20 }
  0xbc   :  { %361 = vsyncpa [#allocation3], 1 }
  0xbd   :  { %363 = vsyncpa [#allocation3 + $0x1], 1 }
  0xbe   :  { %364 = vsyncpa [#allocation6], 1 }
  0xbf   :  { %366 = vsyncpa [#allocation6 + $0x1], 1 }
  0xc0   :  { %367 = vsyncpa [#allocation9], 1 }
  0xc1   :  { %369 = vsyncpa [#allocation9 + $0x1], 1 }
  0xc2   :  { %370 = vsyncpa [#allocation4], 1 }
  0xc3   :  { %372 = vsyncpa [#allocation4 + $0x1], 1 }

</bundles_post_ra>
